<compile_context>
chip_gen: v5e
topology: v5e:2x2
jax: 0.10.0
libtpu: 0.0.40
codegen_flags: <defaults>
</compile_context>

<pallas_src>
import jax
import jax.numpy as jnp
from jax.experimental import pallas as pl
from jax.experimental.pallas import tpu as pltpu


def _round_up(x, m):
    return ((x + m - 1) // m) * m


def _equivariant_mlp_kernel(x_ref, sys_ref, w1_ref, b1_ref, w2_ref, b2_ref,
                            out_ref, acc_h_ref, cnt_ref):
    """One atom tile: layer-1 MLP + segment-sum of hidden activations.

    Layer 2 (w2, b2) is applied once per atom shard in the finalize step,
    exploiting linearity of the segment sum.
    """
    step = pl.program_id(1)

    @pl.when(step == 0)
    def _():
        acc_h_ref[...] = jnp.zeros_like(acc_h_ref)
        cnt_ref[...] = jnp.zeros_like(cnt_ref)

    # ---- layer 1: bf16 MXU inputs (features already bf16), f32 accumulation ----
    h = jnp.dot(x_ref[...], w1_ref[...], preferred_element_type=jnp.float32)
    h = h + b1_ref[...]
    # SiLU with a single EUP transcendental: sigmoid(h) = 0.5*tanh(0.5*h) + 0.5
    h = h * (0.5 * jnp.tanh(0.5 * h) + 0.5)

    # ---- keys_to_samples + sum_over_samples(['atom', ...]) ----
    # Build the (S, TA) one-hot segment tile in-kernel from the int32 system-id
    # tile (VPU compare); padded atoms carry system id -1 -> all-zero column,
    # so they contribute neither to the sums nor to the per-system counts.
    ta = x_ref.shape[0]
    n_sys = acc_h_ref.shape[0]
    sys = sys_ref[...]                                                  # [1, TA]
    onehot = (jax.lax.broadcasted_iota(jnp.int32, (n_sys, ta), 0) == sys)
    onehot = onehot.astype(jnp.float32)                                 # [S, TA]
    cnt_ref[...] += jnp.sum(onehot, axis=1, keepdims=True)              # [S, 1]
    # Segment reduction on the MXU: bf16 inputs (one-hot values exact in bf16),
    # exact f32 accumulation of the per-system hidden sums.
    acc_h_ref[...] += jnp.dot(onehot.astype(jnp.bfloat16),
                              h.astype(jnp.bfloat16),
                              preferred_element_type=jnp.float32)       # [S, H]

    @pl.when(step == pl.num_programs(1) - 1)
    def _():
        # Layer 2 applied once per atom shard to the accumulated hidden sums:
        # sum_a (h_a @ w2 + b2) = (sum_a h_a) @ w2 + count * b2
        pred = jnp.dot(acc_h_ref[...], w2_ref[...],
                       preferred_element_type=jnp.float32)              # [S, O]
        out_ref[0] = pred + cnt_ref[...] * b2_ref[...]


def equivariant_mlp(features, system_ids, n_systems, w1, b1, w2, b2,
                    *, atom_tile=1024, n_par=2):
    """features: [n_atoms, in_f] f32, system_ids: [n_atoms] int -> [n_systems, out_f]."""
    n_atoms, in_f = features.shape
    hidden = w1.shape[1]
    out_f = w2.shape[1]

    # lane/sublane padding: contraction & output dims -> 128, systems -> 8
    in_p = _round_up(in_f, 128)
    h_p = _round_up(hidden, 128)
    o_p = _round_up(out_f, 128)
    s_p = _round_up(n_systems, 8)

    # atom tiling: tile is a multiple of 128; a parallel shard axis of size
    # n_par (clamped to the number of tiles) feeds both TensorCores on v7x.
    ta = min(atom_tile, _round_up(n_atoms, 128))
    n_tiles = pl.cdiv(n_atoms, ta)
    n_par = max(1, min(n_par, n_tiles))
    tiles_per_shard = pl.cdiv(n_tiles, n_par)
    a_p = n_par * tiles_per_shard * ta
    grid = (n_par, tiles_per_shard)

    # zero-padded operands; pad + bf16 cast of the features fuse into a single
    # XLA pass. Padded atoms get system id -1 -> excluded by the one-hot.
    x_p = jnp.pad(features, ((0, a_p - n_atoms), (0, in_p - in_f))).astype(jnp.bfloat16)
    sys_p = jnp.pad(system_ids.astype(jnp.int32), (0, a_p - n_atoms),
                    constant_values=-1).reshape(1, a_p)
    w1_p = jnp.pad(w1, ((0, in_p - in_f), (0, h_p - hidden))).astype(jnp.bfloat16)
    b1_p = jnp.pad(b1, (0, h_p - hidden)).reshape(1, h_p).astype(jnp.float32)
    # w2/b2 used once per shard on already-accumulated sums -> keep f32.
    w2_p = jnp.pad(w2, ((0, h_p - hidden), (0, o_p - out_f))).astype(jnp.float32)
    b2_p = jnp.pad(b2, (0, o_p - out_f)).reshape(1, o_p).astype(jnp.float32)

    def resident(shape):
        return pl.BlockSpec(shape, lambda p, i: (0,) * len(shape))

    partials = pl.pallas_call(
        _equivariant_mlp_kernel,
        out_shape=jax.ShapeDtypeStruct((n_par, s_p, o_p), jnp.float32),
        grid_spec=pltpu.PrefetchScalarGridSpec(
            num_scalar_prefetch=0,
            grid=grid,
            in_specs=[
                pl.BlockSpec((ta, in_p),
                             lambda p, i: (p * tiles_per_shard + i, 0)),  # bf16 feature tile
                pl.BlockSpec((1, ta),
                             lambda p, i: (0, p * tiles_per_shard + i)),  # system-id tile
                resident((in_p, h_p)),                                    # w1 (bf16, resident)
                resident((1, h_p)),                                       # b1
                resident((h_p, o_p)),                                     # w2 (f32, resident)
                resident((1, o_p)),                                       # b2
            ],
            out_specs=pl.BlockSpec((1, s_p, o_p), lambda p, i: (p, 0, 0)),
            scratch_shapes=[
                pltpu.VMEM((s_p, h_p), jnp.float32),   # per-system hidden sums
                pltpu.VMEM((s_p, 1), jnp.float32),     # per-system atom counts
            ],
        ),
        compiler_params=pltpu.CompilerParams(
            # leading axis: independent atom shards (both TCs on v7x);
            # trailing axis: the atom reduction.
            dimension_semantics=("parallel", "arbitrary"),
        ),
    )(x_p, sys_p, w1_p, b1_p, w2_p, b2_p)

    # tiny trailing add of the per-shard partials, then strip padding
    return partials.sum(axis=0)[:n_systems, :out_f]


def reference(features, system_ids, n_systems, w1, b1, w2, b2):
    h = features @ w1 + b1
    h = h * jax.nn.sigmoid(h)
    y = h @ w2 + b2
    return jax.ops.segment_sum(y, system_ids, num_segments=n_systems)


if __name__ == "__main__":
    key = jax.random.PRNGKey(0)
    k_x, k_w1, k_b1, k_w2, k_b2, k_x2, k_s2 = jax.random.split(key, 7)

    in_features, hidden, out_features = 32, 64, 8
    w1 = jax.random.normal(k_w1, (in_features, hidden), dtype=jnp.float32) * 0.1
    b1 = jax.random.normal(k_b1, (hidden,), dtype=jnp.float32) * 0.01
    w2 = jax.random.normal(k_w2, (hidden, out_features), dtype=jnp.float32) * 0.1
    b2 = jax.random.normal(k_b2, (out_features,), dtype=jnp.float32) * 0.01

    # --- case 1: small shapes matching the module's forward (single tile) ---
    n_systems = 2
    atoms_per_system = 8
    n_atoms = n_systems * atoms_per_system
    features = jax.random.normal(k_x, (n_atoms, in_features), dtype=jnp.float32)
    system_ids = jnp.repeat(jnp.arange(n_systems, dtype=jnp.int32), atoms_per_system)

    out = equivariant_mlp(features, system_ids, n_systems, w1, b1, w2, b2)
    out = jax.block_until_ready(out)
    ref = reference(features, system_ids, n_systems, w1, b1, w2, b2)
    assert out.shape == (n_systems, out_features)
    # bf16 feature/segment-dot inputs -> slightly looser tolerance than pure f32
    assert jnp.allclose(out, ref, atol=5e-2, rtol=5e-2), (out, ref)

    # --- case 2: ragged atom count, multiple tiles, 2 parallel shards ---
    n_systems2 = 3
    n_atoms2 = 600
    features2 = jax.random.normal(k_x2, (n_atoms2, in_features), dtype=jnp.float32)
    system_ids2 = jax.random.randint(k_s2, (n_atoms2,), 0, n_systems2, dtype=jnp.int32)

    out2 = equivariant_mlp(features2, system_ids2, n_systems2, w1, b1, w2, b2,
                           atom_tile=128, n_par=2)
    out2 = jax.block_until_ready(out2)
    ref2 = reference(features2, system_ids2, n_systems2, w1, b1, w2, b2)
    assert out2.shape == (n_systems2, out_features)
    assert jnp.allclose(out2, ref2, atol=5e-2, rtol=5e-2), (out2, ref2)

    print("KERNEL_OK")
</pallas_src>

<mosaic_0001>
module attributes {stable_mosaic.version = 11 : i64} {
  func.func @_equivariant_mlp_kernel(%arg0: i32, %arg1: i32, %arg2: memref<128x128xbf16, #tpu.memory_space<vmem>>, %arg3: memref<1x128xi32, #tpu.memory_space<vmem>>, %arg4: memref<128x128xbf16, #tpu.memory_space<vmem>>, %arg5: memref<1x128xf32, #tpu.memory_space<vmem>>, %arg6: memref<128x128xf32, #tpu.memory_space<vmem>>, %arg7: memref<1x128xf32, #tpu.memory_space<vmem>>, %arg8: memref<1x8x128xf32, #tpu.memory_space<vmem>>, %arg9: memref<8x128xf32, #tpu.memory_space<vmem>>, %arg10: memref<8x1xf32, #tpu.memory_space<vmem>>) attributes {dimension_semantics = [#tpu.dimension_semantics<parallel>, #tpu.dimension_semantics<arbitrary>], iteration_bounds = array<i64: 1, 1>, scalar_prefetch = 0 : i64, scratch_operands = 2 : i64, tpu.core_type = #tpu.core_type<tc>, window_params = [{transform_indices = @transform_0, window_bounds = array<i64: 128, 128>}, {transform_indices = @transform_1, window_bounds = array<i64: 1, 128>}, {pipeline_mode = #tpu.pipeline_mode<synchronous>, transform_indices = @transform_2, window_bounds = array<i64: 128, 128>}, {pipeline_mode = #tpu.pipeline_mode<synchronous>, transform_indices = @transform_3, window_bounds = array<i64: 1, 128>}, {pipeline_mode = #tpu.pipeline_mode<synchronous>, transform_indices = @transform_4, window_bounds = array<i64: 128, 128>}, {pipeline_mode = #tpu.pipeline_mode<synchronous>, transform_indices = @transform_5, window_bounds = array<i64: 1, 128>}, {transform_indices = @transform_6, window_bounds = array<i64: 1, 8, 128>}]} {
    %c0_i32 = arith.constant 0 : i32
    %0 = arith.cmpi eq, %arg1, %c0_i32 : i32
    %1 = arith.extui %0 : i1 to i32
    %c0_i32_0 = arith.constant 0 : i32
    %2 = arith.cmpi ne, %1, %c0_i32_0 : i32
    scf.if %2 {
      %cst_23 = arith.constant 0.000000e+00 : f32
      %37 = vector.broadcast %cst_23 : f32 to vector<8x128xf32>
      %c0_24 = arith.constant 0 : index
      %c0_25 = arith.constant 0 : index
      %38 = vector.load %arg9[%c0_24, %c0_25] : memref<8x128xf32, #tpu.memory_space<vmem>>, vector<8x128xf32>
      tpu.vector_store %arg9[%c0_24, %c0_25], %37 {strides = array<i32>} : memref<8x128xf32, #tpu.memory_space<vmem>>, vector<8x128xf32>,
      %cst_26 = arith.constant 0.000000e+00 : f32
      %39 = vector.broadcast %cst_26 : f32 to vector<8x1xf32>
      %c0_27 = arith.constant 0 : index
      %c0_28 = arith.constant 0 : index
      %40 = vector.load %arg10[%c0_27, %c0_28] : memref<8x1xf32, #tpu.memory_space<vmem>>, vector<8x1xf32>
      tpu.vector_store %arg10[%c0_27, %c0_28], %39 {strides = array<i32>} : memref<8x1xf32, #tpu.memory_space<vmem>>, vector<8x1xf32>,
    } else {
    }
    %c0 = arith.constant 0 : index
    %c0_1 = arith.constant 0 : index
    %3 = vector.load %arg2[%c0, %c0_1] : memref<128x128xbf16, #tpu.memory_space<vmem>>, vector<128x128xbf16>
    %c0_2 = arith.constant 0 : index
    %c0_3 = arith.constant 0 : index
    %4 = vector.load %arg4[%c0_2, %c0_3] : memref<128x128xbf16, #tpu.memory_space<vmem>>, vector<128x128xbf16>
    %cst = arith.constant dense<0.000000e+00> : vector<128x128xf32>
    %5 = tpu.matmul %3, %4, %cst {dimension_numbers = #tpu.dot_dimension_numbers<[1], [0], [0], [1], [0, 0, 1, 1], [], []>} : vector<128x128xbf16>, vector<128x128xbf16>, vector<128x128xf32> -> vector<128x128xf32>
    %c0_4 = arith.constant 0 : index
    %c0_5 = arith.constant 0 : index
    %6 = vector.load %arg5[%c0_4, %c0_5] : memref<1x128xf32, #tpu.memory_space<vmem>>, vector<1x128xf32>
    %7 = vector.broadcast %6 : vector<1x128xf32> to vector<128x128xf32>
    %8 = arith.addf %5, %7 : vector<128x128xf32>
    %cst_6 = arith.constant 5.000000e-01 : f32
    %9 = vector.broadcast %cst_6 : f32 to vector<128x128xf32>
    %10 = arith.mulf %9, %8 : vector<128x128xf32>
    %11 = math.tanh %10 : vector<128x128xf32>
    %cst_7 = arith.constant 5.000000e-01 : f32
    %12 = vector.broadcast %cst_7 : f32 to vector<128x128xf32>
    %13 = arith.mulf %12, %11 : vector<128x128xf32>
    %cst_8 = arith.constant 5.000000e-01 : f32
    %14 = vector.broadcast %cst_8 : f32 to vector<128x128xf32>
    %15 = arith.addf %13, %14 : vector<128x128xf32>
    %16 = arith.mulf %8, %15 : vector<128x128xf32>
    %c0_9 = arith.constant 0 : index
    %c0_10 = arith.constant 0 : index
    %17 = vector.load %arg3[%c0_9, %c0_10] : memref<1x128xi32, #tpu.memory_space<vmem>>, vector<1x128xi32>
    %18 = tpu.iota {dimensions = array<i32: 0>} : vector<8x128xi32>
    %19 = vector.broadcast %17 : vector<1x128xi32> to vector<8x128xi32>
    %20 = arith.cmpi eq, %18, %19 : vector<8x128xi32>
    %21 = arith.extui %20 : vector<8x128xi1> to vector<8x128xi32>
    %22 = arith.sitofp %21 : vector<8x128xi32> to vector<8x128xf32>
    %c0_11 = arith.constant 0 : index
    %c0_12 = arith.constant 0 : index
    %23 = vector.load %arg10[%c0_11, %c0_12] : memref<8x1xf32, #tpu.memory_space<vmem>>, vector<8x1xf32>
    %cst_13 = arith.constant dense<0.000000e+00> : vector<8xf32>
    %24 = vector.multi_reduction <add>, %22, %cst_13 [1] : vector<8x128xf32> to vector<8xf32>
    %25 = vector.shape_cast %24 : vector<8xf32> to vector<8x1xf32>
    %26 = arith.addf %23, %25 : vector<8x1xf32>
    %c0_14 = arith.constant 0 : index
    %c0_15 = arith.constant 0 : index
    %27 = vector.load %arg10[%c0_14, %c0_15] : memref<8x1xf32, #tpu.memory_space<vmem>>, vector<8x1xf32>
    tpu.vector_store %arg10[%c0_14, %c0_15], %26 {strides = array<i32>} : memref<8x1xf32, #tpu.memory_space<vmem>>, vector<8x1xf32>,
    %c0_16 = arith.constant 0 : index
    %c0_17 = arith.constant 0 : index
    %28 = vector.load %arg9[%c0_16, %c0_17] : memref<8x128xf32, #tpu.memory_space<vmem>>, vector<8x128xf32>
    %29 = arith.truncf %22 : vector<8x128xf32> to vector<8x128xbf16>
    %30 = arith.truncf %16 : vector<128x128xf32> to vector<128x128xbf16>
    %cst_18 = arith.constant dense<0.000000e+00> : vector<8x128xf32>
    %31 = tpu.matmul %29, %30, %cst_18 {dimension_numbers = #tpu.dot_dimension_numbers<[1], [0], [0], [1], [0, 0, 1, 1], [], []>} : vector<8x128xbf16>, vector<128x128xbf16>, vector<8x128xf32> -> vector<8x128xf32>
    %32 = arith.addf %28, %31 : vector<8x128xf32>
    %c0_19 = arith.constant 0 : index
    %c0_20 = arith.constant 0 : index
    %33 = vector.load %arg9[%c0_19, %c0_20] : memref<8x128xf32, #tpu.memory_space<vmem>>, vector<8x128xf32>
    tpu.vector_store %arg9[%c0_19, %c0_20], %32 {strides = array<i32>} : memref<8x128xf32, #tpu.memory_space<vmem>>, vector<8x128xf32>,
    %c0_i32_21 = arith.constant 0 : i32
    %34 = arith.cmpi eq, %arg1, %c0_i32_21 : i32
    %35 = arith.extui %34 : i1 to i32
    %c0_i32_22 = arith.constant 0 : i32
    %36 = arith.cmpi ne, %35, %c0_i32_22 : i32
    scf.if %36 {
      %c0_23 = arith.constant 0 : index
      %c0_24 = arith.constant 0 : index
      %37 = vector.load %arg9[%c0_23, %c0_24] : memref<8x128xf32, #tpu.memory_space<vmem>>, vector<8x128xf32>
      %c0_25 = arith.constant 0 : index
      %c0_26 = arith.constant 0 : index
      %38 = vector.load %arg6[%c0_25, %c0_26] : memref<128x128xf32, #tpu.memory_space<vmem>>, vector<128x128xf32>
      %cst_27 = arith.constant dense<0.000000e+00> : vector<8x128xf32>
      %39 = tpu.matmul %37, %38, %cst_27 {dimension_numbers = #tpu.dot_dimension_numbers<[1], [0], [0], [1], [0, 0, 1, 1], [], []>} : vector<8x128xf32>, vector<128x128xf32>, vector<8x128xf32> -> vector<8x128xf32>
      %c0_28 = arith.constant 0 : index
      %c0_29 = arith.constant 0 : index
      %40 = vector.load %arg10[%c0_28, %c0_29] : memref<8x1xf32, #tpu.memory_space<vmem>>, vector<8x1xf32>
      %c0_30 = arith.constant 0 : index
      %c0_31 = arith.constant 0 : index
      %41 = vector.load %arg7[%c0_30, %c0_31] : memref<1x128xf32, #tpu.memory_space<vmem>>, vector<1x128xf32>
      %42 = vector.broadcast %40 : vector<8x1xf32> to vector<8x128xf32>
      %43 = vector.broadcast %41 : vector<1x128xf32> to vector<8x128xf32>
      %44 = arith.mulf %42, %43 : vector<8x128xf32>
      %45 = arith.addf %39, %44 : vector<8x128xf32>
      %c0_32 = arith.constant 0 : index
      %c0_33 = arith.constant 0 : index
      %c0_34 = arith.constant 0 : index
      %46 = vector.load %arg8[%c0_32, %c0_33, %c0_34] : memref<1x8x128xf32, #tpu.memory_space<vmem>>, vector<1x8x128xf32>
      %47 = vector.shape_cast %46 : vector<1x8x128xf32> to vector<8x128xf32>
      %48 = vector.shape_cast %45 : vector<8x128xf32> to vector<1x8x128xf32>
      tpu.vector_store %arg8[%c0_32, %c0_33, %c0_34], %48 {strides = array<i32>} : memref<1x8x128xf32, #tpu.memory_space<vmem>>, vector<1x8x128xf32>,
    } else {
    }
    return
  }
  func.func @transform_0(%arg0: i32, %arg1: i32) -> (i32, i32) {
    %c1_i32 = arith.constant 1 : i32
    %0 = arith.muli %arg0, %c1_i32 : i32
    %1 = arith.addi %0, %arg1 : i32
    %c0_i32 = arith.constant 0 : i32
    %c0_i32_0 = arith.constant 0 : i32
    return %1, %c0_i32 : i32, i32
  }
  func.func @transform_1(%arg0: i32, %arg1: i32) -> (i32, i32) {
    %c1_i32 = arith.constant 1 : i32
    %0 = arith.muli %arg0, %c1_i32 : i32
    %1 = arith.addi %0, %arg1 : i32
    %c0_i32 = arith.constant 0 : i32
    %c0_i32_0 = arith.constant 0 : i32
    return %c0_i32, %1 : i32, i32
  }
  func.func @transform_2(%arg0: i32, %arg1: i32) -> (i32, i32) {
    %c0_i32 = arith.constant 0 : i32
    %c0_i32_0 = arith.constant 0 : i32
    %c0_i32_1 = arith.constant 0 : i32
    return %c0_i32, %c0_i32_0 : i32, i32
  }
  func.func @transform_3(%arg0: i32, %arg1: i32) -> (i32, i32) {
    %c0_i32 = arith.constant 0 : i32
    %c0_i32_0 = arith.constant 0 : i32
    %c0_i32_1 = arith.constant 0 : i32
    return %c0_i32, %c0_i32_0 : i32, i32
  }
  func.func @transform_4(%arg0: i32, %arg1: i32) -> (i32, i32) {
    %c0_i32 = arith.constant 0 : i32
    %c0_i32_0 = arith.constant 0 : i32
    %c0_i32_1 = arith.constant 0 : i32
    return %c0_i32, %c0_i32_0 : i32, i32
  }
  func.func @transform_5(%arg0: i32, %arg1: i32) -> (i32, i32) {
    %c0_i32 = arith.constant 0 : i32
    %c0_i32_0 = arith.constant 0 : i32
    %c0_i32_1 = arith.constant 0 : i32
    return %c0_i32, %c0_i32_0 : i32, i32
  }
  func.func @transform_6(%arg0: i32, %arg1: i32) -> (i32, i32, i32) {
    %c0_i32 = arith.constant 0 : i32
    %c0_i32_0 = arith.constant 0 : i32
    %c0_i32_1 = arith.constant 0 : i32
    return %arg0, %c0_i32, %c0_i32_0 : i32, i32, i32
  }
}

</mosaic_0001>

<bundles_post_ra>
// kernel: tpu_custom_call.1
= control target key start
LH: loop header
LB: loop body
LE: loop exit
PB: predicated region body
PF: predicated region fallthrough
CT: control target
= control target key end

     0   :  { %11 = vsyncpa [#allocation5], 0  ;;  %s892_s0 = inlined_call_operand.hbm [shape: bf16[128,128], index: 0, kind: input, shape index: {}]   ;;  %s893_s1 = inlined_call_operand.hbm [shape: s32[1,128], index: 1, kind: input, shape index: {}]   ;;  %s894_s2 = inlined_call_operand.hbm [shape: bf16[128,128], index: 2, kind: input, shape index: {}]   ;;  %s895_s3 = inlined_call_operand.vmem [shape: f32[1,128], index: 3, kind: input, shape index: {}]   ;;  %s896_s4 = inlined_call_operand.hbm [shape: f32[128,128], index: 4, kind: input, shape index: {}]   ;;  %s897_s5 = inlined_call_operand.vmem [shape: f32[1,128], index: 5, kind: input, shape index: {}]   ;;  %s898_s6 = inlined_call_operand.hbm [shape: f32[1,8,128], index: 6, kind: output, shape index: {}]  }
   0x1   :  { %12 = vsyncpa [#allocation8], 0 }
   0x2   :  { %13 = vsyncpa [#allocation11], 0  ;;  %s39_s23 = sshll.u32 %s893_s1, 4  ;;  %s40_s23 = int_to_ptr.hbm [resolvable:$true] %s39_s23 }
   0x3   :  { %14 = vsyncpa [#allocation6], 0  ;;  %s746_s24 = smov [#allocation7]   ;;  %s23_s28 = sshll.u32 %s892_s0, 4  ;;  %s24_s28 = int_to_ptr.hbm [resolvable:$true] %s23_s28 }
   0x4   :  { %s41_s25 = sshll.u32 %s746_s24, 4  ;;  %s747_s29 = smov [#allocation4]   ;;  %s42_s25 = int_to_ptr.vmem [resolvable:$true] %s41_s25 }
   0x5   :  { %44 = dma.hbm_to_vmem [thread:$0]  %s40_s23, 16, %s42_s25, [#allocation8]  }
   0x6   :  { %s25_s30 = sshll.u32 %s747_s29, 4  ;;  %s748_s7 = smov 64   ;;  %s26_s30 = int_to_ptr.vmem [resolvable:$true] %s25_s30 }
   0x7   :  { %s749_s8 = smov 4   ;;  %s49_s1 = sshll.u32 %s894_s2, 4  ;;  %s50_s1 = int_to_ptr.hbm [resolvable:$true] %s49_s1 }
   0x8   :  { %31 = dma.hbm_to_vmem [thread:$0]  %s24_s28, 1024, %s26_s30, [#allocation5], %s748_s7, %s748_s7, %s749_s8  }
   0x9   :  { %s750_s11 = smov [#allocation9]   ;;  %s64_s0 = sshll.u32 %s896_s4, 4  ;;  %s65_s0 = int_to_ptr.hbm [resolvable:$true] %s64_s0 }
   0xa   :  { %s51_s12 = sshll.u32 %s750_s11, 4  ;;  %s751_s15 = smov [#allocation10]   ;;  %s52_s12 = int_to_ptr.vmem [resolvable:$true] %s51_s12 }
   0xb   :  { %57 = dma.hbm_to_vmem [thread:$0]  %s50_s1, 1024, %s52_s12, [#allocation8], %s748_s7, %s748_s7, %s749_s8  }
   0xc   :  { %s66_s16 = sshll.u32 %s751_s15, 4  ;;  %s752_s17 = smov 128   ;;  %s67_s16 = int_to_ptr.vmem [resolvable:$true] %s66_s16 }
   0xd   :  { %s753_s18 = smov 8  }
   0xe   :  { %72 = dma.hbm_to_vmem [thread:$0]  %s65_s0, 2048, %s67_s16, [#allocation11], %s752_s17, %s752_s17, %s753_s18  }
   0xf   :  { %738 = dma.done.wait [#allocation5], 1024  }
  0x10   :  { %739 = vsyncadd [#allocation5], 4294966272 }
  0x11   :  { %740 = dma.done.wait [#allocation8], 1040  }
  0x12   :  { %741 = vsyncadd [#allocation8], 4294966256 }
  0x13   :  { %742 = dma.done.wait [#allocation11], 2048  }
  0x14   :  { %743 = vsyncadd [#allocation11], 4294965248  ;;  %v553_v0 = vld [vmem:[#allocation9 + $0x38] sm:$0xff]  ;;  %v552_v1 = vld [vmem:[#allocation9 + $0x30] sm:$0xff]  ;;  %vm99_vm1 = vcmask 7168   ;;  %s757_s20 = smov [#allocation12]  }
  0x15   :  { %555 = vmatpush.bf16.msra.mxu3 %v553_v0  ;;  %233 = vmatpush.bf16.msra.mxu0 %v553_v0  ;;  %v551_v2 = vld [vmem:[#allocation9 + $0x28] sm:$0xff]  ;;  %v550_v3 = vld [vmem:[#allocation9 + $0x20] sm:$0xff]  ;;  %v549_v4 = vld [vmem:[#allocation9 + $0x18] sm:$0xff]  ;;  %s457_s21 = sshll.u32 %s757_s20, 4  ;;  %s459_s24 = sshll.u32 %s898_s6, 4  ;;  %s458_s21 = int_to_ptr.vmem [resolvable:$true] %s457_s21  ;;  %s460_s24 = int_to_ptr.hbm [resolvable:$true] %s459_s24 }
  0x16   :  { %554 = vmatpush.bf16.msra.mxu2 %v553_v0  ;;  %v548_v5 = vld [vmem:[#allocation9 + $0x10] sm:$0xff]  ;;  %v547_v6 = vld [vmem:[#allocation9 + $0x8] sm:$0xff]  ;;  %v546_v7 = vld [vmem:[#allocation9] sm:$0xff] }
  0x17   :  { %v543_v8 = vld [vmem:[#allocation4 + $0x28] sm:$0xff]  ;;  %v538_v9 = vld [vmem:[#allocation4] sm:$0xff]  ;;  %v541_v10 = vld [vmem:[#allocation4 + $0x18] sm:$0xff] }
  0x18   :  { %v544_v11 = vld [vmem:[#allocation4 + $0x30] sm:$0xff]  ;;  %v539_v12 = vld [vmem:[#allocation4 + $0x8] sm:$0xff]  ;;  %v542_v13 = vld [vmem:[#allocation4 + $0x20] sm:$0xff] }
  0x19   :  { %557 = vmatpush.bf16.msra.mxu3 %v552_v1  ;;  %234 = vmatpush.bf16.msra.mxu0 %v552_v1  ;;  %v545_v14 = vld [vmem:[#allocation4 + $0x38] sm:$0xff]  ;;  %v540_v15 = vld [vmem:[#allocation4 + $0x10] sm:$0xff] }
  0x1a   :  { %556 = vmatpush.bf16.msra.mxu2 %v552_v1  ;;  %v583_v27 = vld [vmem:[%s895_s3] ss:$0 sm:$0xff] }
  0x1d   :  { %559 = vmatpush.bf16.msra.mxu3 %v551_v2  ;;  %235 = vmatpush.bf16.msra.mxu0 %v551_v2 }
  0x1e   :  { %558 = vmatpush.bf16.msra.mxu2 %v551_v2 }
  0x21   :  { %561 = vmatpush.bf16.msra.mxu3 %v550_v3  ;;  %236 = vmatpush.bf16.msra.mxu0 %v550_v3 }
  0x22   :  { %560 = vmatpush.bf16.msra.mxu2 %v550_v3 }
  0x25   :  { %563 = vmatpush.bf16.msra.mxu3 %v549_v4  ;;  %237 = vmatpush.bf16.msra.mxu0 %v549_v4 }
  0x26   :  { %562 = vmatpush.bf16.msra.mxu2 %v549_v4 }
  0x29   :  { %565 = vmatpush.bf16.msra.mxu3 %v548_v5  ;;  %238 = vmatpush.bf16.msra.mxu0 %v548_v5 }
  0x2a   :  { %564 = vmatpush.bf16.msra.mxu2 %v548_v5 }
  0x2d   :  { %567 = vmatpush.bf16.msra.mxu3 %v547_v6  ;;  %239 = vmatpush.bf16.msra.mxu0 %v547_v6 }
  0x2e   :  { %566 = vmatpush.bf16.msra.mxu2 %v547_v6 }
  0x31   :  { %569 = vmatpush.bf16.msra.mxu3 %v546_v7  ;;  %240 = vmatpush.bf16.msra.mxu0 %v546_v7 }
  0x32   :  { %568 = vmatpush.bf16.msra.mxu2 %v546_v7 }
  0x34   :  { %266 = vmatmul.bf16.vlgmr.msra.gmra.mxu3 %v543_v8  ;;  %241 = vmatmul.bf16.vlgmr.msra.gmra.mxu0 %v538_v9  ;;  %v363_v8 = vlaneseq }
  0x35   :  { %256 = vmatmul.bf16.vlgmr.msra.gmra.mxu2 %v541_v10 }
  0x44   :  { %271 = vmatmul.bf16.gmra.mxu3 %v544_v11  ;;  %246 = vmatmul.bf16.gmra.mxu0 %v539_v12 }
  0x45   :  { %261 = vmatmul.bf16.gmra.mxu2 %v542_v13 }
  0x54   :  { %276 = vmatmul.bf16.gmra.mxu3 %v545_v14  ;;  %251 = vmatmul.bf16.gmra.mxu0 %v540_v15 }
  0xb1   :  { %v242_v16 = vpop.f32.mrf.mxu0 }
  0xb2   :  { %v841_v62 = vadd.f32 %v583_v27, %v242_v16  ;;  %v853_v16 = vshrl.u32 %v363_v8, 7  ;;  %v413_v8 = vld [vmem:[#allocation10 + $0x48] sm:$0xff] }
  0xb7   :  { %v267_v17 = vpop.f32.mrf.mxu3 }
  0xb8   :  { %v257_v19 = vpop.f32.mrf.mxu2  ;;  %v820_v36 = vadd.f32 %v583_v27, %v267_v17  ;;  %v855_v17 = vld [vmem:[#allocation7] ss:$0 sm:$0xff] }
  0xb9   :  { %v805_v18 = vpop.f32.mrf.mxu0  ;;  %v829_v45 = vadd.f32 %v583_v27, %v257_v19  ;;  %vm366_vm0 = vcmp.eq.s32.totalorder %v853_v16, %v855_v17  ;;  %v585_v16 = vld [vmem:[%s897_s5] ss:$0 sm:$0xff] }
  0xba   :  { %v292_v44 = vmul.f32 0.5, %v820_v36  ;;  %v850_v14 = vadd.f32 %v583_v27, %v805_v18  ;;  %vm536_vm2 = vmpackc.low %vm366_vm0, %vm366_vm0 }
  0xbb   :  { %v288_v51 = vmul.f32 0.5, %v829_v45 }
  0xbf   :  { %v269_v20 = vpop.f32.mrf.mxu3 }
  0xc0   :  { %v259_v23 = vpop.f32.mrf.mxu2  ;;  %v817_v33 = vadd.f32 %v583_v27, %v269_v20 }
  0xc1   :  { %v247_v21 = vpop.f32.mrf.mxu0  ;;  %v831_v46 = vadd.f32 %v583_v27, %v259_v23 }
  0xc2   :  { %v293_v39 = vmul.f32 0.5, %v817_v33  ;;  %v843_v63 = vadd.f32 %v583_v27, %v247_v21 }
  0xc3   :  { %v289_v54 = vmul.f32 0.5, %v831_v46 }
  0xc4   :  { %v284_v15 = vmul.f32 0.5, %v843_v63 }
  0xc7   :  { %v272_v22 = vpop.f32.mrf.mxu3 }
  0xc8   :  { %v262_v26 = vpop.f32.mrf.mxu2  ;;  %v814_v31 = vadd.f32 %v583_v27, %v272_v22 }
  0xc9   :  { %v249_v25 = vpop.f32.mrf.mxu0  ;;  %v824_v40 = vadd.f32 %v583_v27, %v262_v26 }
  0xca   :  { %v294_v38 = vmul.f32 0.5, %v814_v31  ;;  %v846_v6 = vadd.f32 %v583_v27, %v249_v25 }
  0xcb   :  { %v290_v48 = vmul.f32 0.5, %v824_v40 }
  0xcc   :  { %v285_v26 = vmul.f32 0.5, %v846_v6 }
  0xcf   :  { %v274_v24 = vpop.f32.mrf.mxu3 }
  0xd0   :  { %v810_v29 = vadd.f32 %v583_v27, %v274_v24  ;;  %v264_v37 = vpop.f32.mrf.mxu2  ;;  %v282_v24 = vmul.f32 0.5, %v841_v62 }
  0xd1   :  { %v252_v34 = vpop.f32.mrf.mxu0  ;;  %v826_v42 = vadd.f32 %v583_v27, %v264_v37  ;;  %v283_v37 = vmul.f32 0.5, %v850_v14 }
  0xd2   :  { %v295_v35 = vmul.f32 0.5, %v810_v29  ;;  %v837_v55 = vadd.f32 %v583_v27, %v252_v34 }
  0xd3   :  { %v291_v50 = vmul.f32 0.5, %v826_v42 }
  0xd4   :  { %v286_v2 = vmul.f32 0.5, %v837_v55 }
  0xd7   :  { %v277_v28 = vpop.f32.mrf.mxu3 }
  0xd8   :  { %v812_v30 = vadd.f32 %v583_v27, %v277_v28 }
  0xd9   :  { %v254_v52 = vpop.f32.mrf.mxu0 }
  0xda   :  { %v296_v32 = vmul.f32 0.5, %v812_v30  ;;  %v839_v58 = vadd.f32 %v583_v27, %v254_v52 }
  0xdc   :  { %586 = vtanh.f32 %v296_v32  ;;  %v287_v7 = vmul.f32 0.5, %v839_v58 }
  0xdd   :  { %588 = vtanh.f32 %v295_v35  ;;  %v419_v35 = vld [vmem:[#allocation10 + $0x78] sm:$0xff] }
  0xde   :  { %590 = vtanh.f32 %v294_v38  ;;  %431 = vmatpush.msrb.mxu2 %v419_v35 }
  0xdf   :  { %v279_v41 = vpop.f32.mrf.mxu3  ;;  %592 = vtanh.f32 %v293_v39  ;;  %v754_v39 = vmov 0.0  }
  0xe0   :  { %v280_v43 = vadd.f32 %v583_v27, %v279_v41  ;;  %100 = vst.msk [vmem:[#allocation3] sm:$0xff] %vm99_vm1, %v754_v39 }
  0xe2   :  { %v297_v47 = vmul.f32 0.5, %v280_v43  ;;  %v587_v49 = vpop.eup %586 }
  0xe3   :  { %v589_v53 = vpop.eup %588  ;;  %v328_v56 = vmul.f32 0.5, %v587_v49 }
  0xe4   :  { %594 = vtanh.f32 %v297_v47  ;;  %v591_v57 = vpop.eup %590  ;;  %v327_v60 = vmul.f32 0.5, %v589_v53  ;;  %v417_v47 = vld [vmem:[#allocation10 + $0x68] sm:$0xff]  ;;  %v416_v53 = vld [vmem:[#allocation10 + $0x60] sm:$0xff] }
  0xe5   :  { %596 = vtanh.f32 %v292_v44  ;;  %v593_v59 = vpop.eup %592  ;;  %v326_v1 = vmul.f32 0.5, %v591_v57  ;;  %v344_v4 = vadd.f32 0.5, %v328_v56  ;;  %v415_v57 = vld [vmem:[#allocation10 + $0x58] sm:$0xff] }
  0xe6   :  { %598 = vtanh.f32 %v290_v48  ;;  %v325_v5 = vmul.f32 0.5, %v593_v59  ;;  %v343_v10 = vadd.f32 0.5, %v327_v60 }
  0xe7   :  { %600 = vtanh.f32 %v291_v50  ;;  %v342_v20 = vadd.f32 0.5, %v326_v1  ;;  %v360_v21 = vmul.f32 %v344_v4, %v812_v30  ;;  %v418_v30 = vld [vmem:[#allocation10 + $0x70] sm:$0xff] }
  0xe8   :  { %602 = vtanh.f32 %v288_v51  ;;  %v341_v25 = vadd.f32 0.5, %v325_v5  ;;  %v359_v27 = vmul.f32 %v343_v10, %v810_v29  ;;  %v535_v29 = vsel %vm366_vm0, 1.0, %v754_v39  ;;  %432 = vmatpush.msrb.mxu2 %v418_v30  ;;  %v406_v30 = vld [vmem:[#allocation10 + $0x10] sm:$0xff] }
  0xe9   :  { %604 = vtanh.f32 %v289_v54  ;;  %v358_v38 = vmul.f32 %v342_v20, %v814_v31  ;;  %370 = vadd.xlane.f32.xlu0 %v535_v29  ;;  %v411_v20 = vld [vmem:[#allocation10 + $0x38] sm:$0xff]  ;;  %v756_v29 = vmov 0  }
  0xea   :  { %v595_v61 = vpop.eup %594  ;;  %606 = vtanh.f32 %v286_v2  ;;  %433 = vmatpush.msrb.mxu2 %v417_v47  ;;  %582 = vset.pattern.permute.xlu0 %v756_v29 }
  0xeb   :  { %v597_v0 = vpop.eup %596  ;;  %v329_v3 = vmul.f32 0.5, %v595_v61  ;;  %608 = vtanh.f32 %v287_v7  ;;  %v383_v31 = vpack.c.bf16 %v359_v27, %v358_v38 }
  0xec   :  { %v599_v9 = vpop.eup %598  ;;  %v324_v13 = vmul.f32 0.5, %v597_v0  ;;  %610 = vtanh.f32 %v284_v15  ;;  %434 = vmatpush.msrb.mxu2 %v416_v53 }
  0xed   :  { %v345_v11 = vadd.f32 0.5, %v329_v3  ;;  %v601_v12 = vpop.eup %600  ;;  %v322_v18 = vmul.f32 0.5, %v599_v9  ;;  %612 = vtanh.f32 %v285_v26  ;;  %v414_v3 = vld [vmem:[#allocation10 + $0x50] sm:$0xff] }
  0xee   :  { %v603_v19 = vpop.eup %602  ;;  %v323_v28 = vmul.f32 0.5, %v601_v12  ;;  %v340_v34 = vadd.f32 0.5, %v324_v13  ;;  %614 = vtanh.f32 %v282_v24  ;;  %435 = vmatpush.msrb.mxu2 %v415_v57 }
  0xef   :  { %v361_v22 = vmul.f32 %v345_v11, %v280_v43  ;;  %v605_v23 = vpop.eup %604  ;;  %v320_v41 = vmul.f32 0.5, %v603_v19  ;;  %v357_v43 = vmul.f32 %v341_v25, %v817_v33  ;;  %v338_v49 = vadd.f32 0.5, %v322_v18  ;;  %v409_v25 = vld [vmem:[#allocation10 + $0x28] sm:$0xff] }
  0xf0   :  { %v321_v44 = vmul.f32 0.5, %v605_v23  ;;  %v607_v48 = vpop.eup %606  ;;  %v339_v50 = vadd.f32 0.5, %v323_v28  ;;  %v356_v52 = vmul.f32 %v340_v34, %v820_v36  ;;  %616 = vtanh.f32 %v283_v37  ;;  %436 = vmatpush.msrb.mxu2 %v414_v3  ;;  %v410_v23 = vld [vmem:[#allocation10 + $0x30] sm:$0xff]  ;;  %v405_v37 = vld [vmem:[#allocation10 + $0x8] sm:$0xff] }
  0xf1   :  { %v384_v32 = vpack.c.bf16 %v361_v22, %v360_v21  ;;  %v609_v51 = vpop.eup %608  ;;  %v336_v54 = vadd.f32 0.5, %v320_v41  ;;  %v354_v60 = vmul.f32 %v338_v49, %v824_v40  ;;  %v318_v61 = vmul.f32 0.5, %v607_v48 }
  0xf2   :  { %v337_v56 = vadd.f32 0.5, %v321_v44  ;;  %v382_v33 = vpack.c.bf16 %v357_v43, %v356_v52  ;;  %v611_v59 = vpop.eup %610  ;;  %v355_v0 = vmul.f32 %v339_v50, %v826_v42  ;;  %v319_v1 = vmul.f32 0.5, %v609_v51  ;;  %v412_v42 = vld [vmem:[#allocation10 + $0x40] sm:$0xff]  ;;  %437 = vmatpush.msrb.mxu2 %v413_v8 }
  0xf3   :  { %385 = vmatpush.bf16.msra.mxu1 %v384_v32  ;;  %v613_v2 = vpop.eup %612  ;;  %v352_v4 = vmul.f32 %v336_v54, %v829_v45  ;;  %v316_v5 = vmul.f32 0.5, %v611_v59  ;;  %v334_v11 = vadd.f32 0.5, %v318_v61  ;;  %v408_v32 = vld [vmem:[#allocation10 + $0x20] sm:$0xff] }
  0xf4   :  { %v615_v36 = vpop.eup %614  ;;  %v353_v7 = vmul.f32 %v337_v56, %v831_v46  ;;  %v317_v10 = vmul.f32 0.5, %v613_v2  ;;  %v335_v40 = vadd.f32 0.5, %v319_v1  ;;  %v381_v12 = vpack.c.bf16 %v355_v0, %v354_v60  ;;  %438 = vmatpush.msrb.mxu2 %v412_v42 }
  0xf5   :  { %v314_v13 = vmul.f32 0.5, %v615_v36  ;;  %v332_v19 = vadd.f32 0.5, %v316_v5  ;;  %v350_v45 = vmul.f32 %v334_v11, %v837_v55  ;;  %v407_v55 = vld [vmem:[#allocation10 + $0x18] sm:$0xff] }
  0xf6   :  { %v617_v9 = vpop.eup %616  ;;  %v333_v21 = vadd.f32 0.5, %v317_v10  ;;  %v351_v22 = vmul.f32 %v335_v40, %v839_v58  ;;  %v380_v46 = vpack.c.bf16 %v353_v7, %v352_v4  ;;  %439 = vmatpush.msrb.mxu2 %v411_v20 }
  0xf7   :  { %386 = vmatpush.bf16.msra.mxu1 %v383_v31  ;;  %v315_v15 = vmul.f32 0.5, %v617_v9  ;;  %v330_v24 = vadd.f32 0.5, %v314_v13  ;;  %v348_v18 = vmul.f32 %v332_v19, %v843_v63  ;;  %v404_v63 = vld [vmem:[#allocation10] sm:$0xff] }
  0xf8   :  { %v349_v27 = vmul.f32 %v333_v21, %v846_v6  ;;  %v379_v28 = vpack.c.bf16 %v351_v22, %v350_v45  ;;  %440 = vmatpush.msrb.mxu2 %v410_v23 }
  0xf9   :  { %v331_v26 = vadd.f32 0.5, %v315_v15  ;;  %v346_v58 = vmul.f32 %v330_v24, %v841_v62  ;;  %v755_v62 = vmov 1.0|1.0  }
  0xfa   :  { %441 = vmatpush.msrb.mxu2 %v409_v25  ;;  %v378_v35 = vpack.c.bf16 %v349_v27, %v348_v18 }
  0xfb   :  { %387 = vmatpush.bf16.msra.mxu1 %v382_v33  ;;  %v347_v34 = vmul.f32 %v331_v26, %v850_v14  ;;  %v369_v14 = vld [vmem:[#allocation3] sm:$0xff] }
  0xfc   :  { %442 = vmatpush.msrb.mxu2 %v408_v32 }
  0xfd   :  { %v377_v38 = vpack.c.bf16 %v347_v34, %v346_v58 }
  0xfe   :  { %443 = vmatpush.msrb.mxu2 %v407_v55 }
  0xff   :  { %388 = vmatpush.bf16.msra.mxu1 %v381_v12 }
 0x100   :  { %444 = vmatpush.msrb.mxu2 %v406_v30 }
 0x102   :  { %445 = vmatpush.msrb.mxu2 %v405_v37 }
 0x103   :  { %389 = vmatpush.bf16.msra.mxu1 %v380_v46 }
 0x104   :  { %446 = vmatpush.msrb.mxu2 %v404_v63 }
 0x107   :  { %390 = vmatpush.bf16.msra.mxu1 %v379_v28 }
 0x10b   :  { %391 = vmatpush.bf16.msra.mxu1 %v378_v35 }
 0x10f   :  { %392 = vmatpush.bf16.msra.mxu1 %v377_v38 }
 0x112   :  { %537 = vmatmul.msk.bf16.vlgmr.msra.gmra.mxu1 %vm536_vm2, %v755_v62 }
 0x15c   :  { %v371_v6 = vpop.xlane.xlu0 %370 }
 0x15d   :  { %v372_v39 = vadd.f32 %v371_v6, %v369_v14 }
 0x15f   :  { %374 = vst.msk [vmem:[#allocation3] sm:$0xff] %vm99_vm1, %v372_v39 }
 0x166   :  { %v420_v41 = vld [vmem:[#allocation3] sm:$0xff] }
 0x167   :  { %424 = vperm.xlu0 %582, %v420_v41  }
 0x18f   :  { %v394_v43 = vpop.f32.mrf.mxu1 }
 0x190   :  { %447 = vmatmul.f32.vlgmr.msrb.gmra.mxu2 %v394_v43 }
 0x197   :  { %v396_v44 = vpop.f32.mrf.mxu1 }
 0x1d9   :  { %v425_v17 = vpop.permute.xlu0 %424 }
 0x1da   :  { %v430_v47 = vmul.f32 %v585_v16, %v425_v17 }
 0x213   :  { %v448_v48 = vpop.f32.mrf.mxu2 }
 0x214   :  { %v449_v49 = vadd.f32 %v448_v48, %v430_v47 }
 0x216   :  { %451 = vst [vmem:[#allocation12] sm:$0xff] %v449_v49 }
 0x217   :  { %462 = dma.vmem_to_hbm [thread:$0]  %s458_s21, 128, %s460_s24, [#allocation6]  }
 0x218   :  { %744 = dma.done.wait [#allocation6], 128  }
 0x219   :  { %745 = vsyncadd [#allocation6], 4294967168 }
 0x21a   :  { %467 = vsyncpa [#allocation5], 1 }
 0x21b   :  { %468 = vsyncpa [#allocation8], 1 }
 0x21c   :  { %469 = vsyncpa [#allocation11], 1 }
 0x21d   :  { %470 = vsyncpa [#allocation6], 1 }

</bundles_post_ra>
